<compile_context>
chip_gen: v7x
topology: tpu7x:2x2x1
jax: 0.10.0
libtpu: 0.0.40
codegen_flags: <defaults>
</compile_context>

<pallas_src>
import functools

import jax
import jax.numpy as jnp
from jax.experimental import pallas as pl
from jax.experimental.pallas import tpu as pltpu


# ----------------------------- Pallas kernel -----------------------------

def _gem_kernel(eps, p_ref, x_ref, o_ref):
    # p_ref: (1,) f32 in SMEM; x_ref: (1, W, C*H) in VMEM; o_ref: (1, 1, C*H) in VMEM.
    p = p_ref[0]
    x = x_ref[0]                                   # (W, C*H), lane-dense
    xc = jnp.maximum(x, eps)                       # clamp(min=eps)  -> xc > 0
    xp = jnp.exp(p * jnp.log(xc))                  # xc ** p   (EUP transcendentals)
    m = jnp.mean(xp, axis=0, keepdims=True)        # (1, C*H): avg_pool2d kernel (1, W)
    o_ref[0] = jnp.exp(jnp.log(m) * (1.0 / p))     # m ** (1/p), lane-dense store


# ----------------------------- wrapper -----------------------------

def gem(x, p, eps=1e-6):
    """GeM pooling: x (N, C, H, W), p (1,) learnable scalar -> (N, C, H, 1)."""
    N, C, H, W = x.shape
    CH = C * H
    # Layout plumbing in the wrapper (cheap): reduction axis W -> sublanes,
    # C*H -> lanes so all vector work and the output stores are lane-dense.
    xt = jnp.transpose(x, (0, 3, 1, 2)).reshape(N, W, CH)
    out = pl.pallas_call(
        functools.partial(_gem_kernel, float(eps)),
        out_shape=jax.ShapeDtypeStruct((N, 1, CH), jnp.float32),
        grid=(N,),
        in_specs=[
            pl.BlockSpec(memory_space=pltpu.MemorySpace.SMEM),   # p: scalar parameter
            pl.BlockSpec((1, W, CH), lambda n: (n, 0, 0)),       # x: one sample per step
        ],
        out_specs=pl.BlockSpec((1, 1, CH), lambda n: (n, 0, 0)),
        compiler_params=pltpu.CompilerParams(dimension_semantics=("parallel",)),
    )(p, xt)
    return out.reshape(N, C, H, 1)


# ----------------------------- pure-JAX reference -----------------------------

def gem_ref(x, p, eps=1e-6):
    xc = jnp.maximum(x, eps)
    xp = xc ** p[0]
    m = jnp.mean(xp, axis=-1, keepdims=True)        # avg_pool2d with kernel (1, W)
    return m ** (1.0 / p[0])


# ----------------------------- main -----------------------------

if __name__ == "__main__":
    key = jax.random.PRNGKey(0)
    N, C, H, W = 2, 32, 16, 16                      # batch, channels, frames, joints
    x = jax.random.normal(key, (N, C, H, W), jnp.float32)
    p = jnp.full((1,), 6.5, jnp.float32)            # GeM default p=6.5 (learnable Parameter)
    eps = 1e-6

    out = gem(x, p, eps)
    out = jax.block_until_ready(out)

    ref = gem_ref(x, p, eps)
    assert out.shape == (N, C, H, 1), out.shape
    max_err = float(jnp.max(jnp.abs(out - ref)))
    assert bool(jnp.allclose(out, ref, atol=1e-5, rtol=1e-4)), max_err

    print("KERNEL_OK")
</pallas_src>

<mosaic_0001>
module attributes {stable_mosaic.version = 11 : i64} {
  func.func @_gem_kernel(%arg0: i32, %arg1: memref<1xf32, #tpu.memory_space<smem>>, %arg2: memref<1x16x512xf32, #tpu.memory_space<vmem>>, %arg3: memref<1x1x512xf32, #tpu.memory_space<vmem>>) attributes {dimension_semantics = [#tpu.dimension_semantics<parallel>], iteration_bounds = array<i64: 2>, scalar_prefetch = 0 : i64, scratch_operands = 0 : i64, tpu.core_type = #tpu.core_type<tc>, window_params = [{transform_indices = @transform_0, window_bounds = array<i64: 1>}, {transform_indices = @transform_1, window_bounds = array<i64: 1, 16, 512>}, {transform_indices = @transform_2, window_bounds = array<i64: 1, 1, 512>}]} {
    %c0 = arith.constant 0 : index
    %0 = memref.load %arg1[%c0] : memref<1xf32, #tpu.memory_space<smem>>
    %c0_0 = arith.constant 0 : index
    %c0_1 = arith.constant 0 : index
    %c0_2 = arith.constant 0 : index
    %1 = vector.load %arg2[%c0_0, %c0_1, %c0_2] : memref<1x16x512xf32, #tpu.memory_space<vmem>>, vector<1x16x512xf32>
    %2 = vector.shape_cast %1 : vector<1x16x512xf32> to vector<16x512xf32>
    %cst = arith.constant 9.99999997E-7 : f32
    %3 = vector.broadcast %cst : f32 to vector<16x512xf32>
    %4 = arith.maximumf %2, %3 : vector<16x512xf32>
    %5 = math.log %4 : vector<16x512xf32>
    %6 = vector.broadcast %0 : f32 to vector<16x512xf32>
    %7 = arith.mulf %6, %5 : vector<16x512xf32>
    %8 = math.exp %7 : vector<16x512xf32>
    %cst_3 = arith.constant dense<0.000000e+00> : vector<512xf32>
    %9 = vector.multi_reduction <add>, %8, %cst_3 [0] : vector<16x512xf32> to vector<512xf32>
    %10 = vector.shape_cast %9 : vector<512xf32> to vector<1x512xf32>
    %cst_4 = arith.constant 1.600000e+01 : f32
    %11 = vector.broadcast %cst_4 : f32 to vector<1x512xf32>
    %12 = arith.divf %10, %11 : vector<1x512xf32>
    %13 = math.log %12 : vector<1x512xf32>
    %cst_5 = arith.constant 1.000000e+00 : f32
    %14 = arith.divf %cst_5, %0 : f32
    %15 = vector.broadcast %14 : f32 to vector<1x512xf32>
    %16 = arith.mulf %13, %15 : vector<1x512xf32>
    %17 = math.exp %16 : vector<1x512xf32>
    %c0_6 = arith.constant 0 : index
    %c0_7 = arith.constant 0 : index
    %c0_8 = arith.constant 0 : index
    %18 = vector.load %arg3[%c0_6, %c0_7, %c0_8] : memref<1x1x512xf32, #tpu.memory_space<vmem>>, vector<1x1x512xf32>
    %19 = vector.shape_cast %18 : vector<1x1x512xf32> to vector<1x512xf32>
    %20 = vector.shape_cast %17 : vector<1x512xf32> to vector<1x1x512xf32>
    tpu.vector_store %arg3[%c0_6, %c0_7, %c0_8], %20 {strides = array<i32>} : memref<1x1x512xf32, #tpu.memory_space<vmem>>, vector<1x1x512xf32>,
    return
  }
  func.func @transform_0(%arg0: i32) -> i32 {
    %c0_i32 = arith.constant 0 : i32
    %c0_i32_0 = arith.constant 0 : i32
    return %c0_i32 : i32
  }
  func.func @transform_1(%arg0: i32) -> (i32, i32, i32) {
    %c0_i32 = arith.constant 0 : i32
    %c0_i32_0 = arith.constant 0 : i32
    %c0_i32_1 = arith.constant 0 : i32
    return %arg0, %c0_i32, %c0_i32_0 : i32, i32, i32
  }
  func.func @transform_2(%arg0: i32) -> (i32, i32, i32) {
    %c0_i32 = arith.constant 0 : i32
    %c0_i32_0 = arith.constant 0 : i32
    %c0_i32_1 = arith.constant 0 : i32
    return %arg0, %c0_i32, %c0_i32_0 : i32, i32, i32
  }
}

</mosaic_0001>

<bundles_post_ra>
// kernel: tpu_custom_call.1
= control target key start
LH: loop header
LB: loop body
LE: loop exit
PB: predicated region body
PF: predicated region fallthrough
CT: control target
= control target key end

     0   :  { %s796_s0 = inlined_call_operand.<no memory space> [shape: f32[1], index: 0, kind: input, shape index: {}]   ;;  %s797_s1 = inlined_call_operand.hbm [shape: f32[2,16,512], index: 1, kind: input, shape index: {}]   ;;  %s798_s2 = inlined_call_operand.hbm [shape: f32[2,1,512], index: 2, kind: output, shape index: {}]  }
   0x1   :  { %7 = sst [smem:[#allocation2]] %s796_s0 }
   0x2   :  { %8 = vsyncpa [#allocation4], 0 }
   0x3   :  { %10 = vsyncpa [#allocation4 + $0x1], 0 }
   0x4   :  { %11 = vsyncpa [#allocation5], 0 }
   0x5   :  { %13 = vsyncpa [#allocation5 + $0x1], 0  ;;  %s635_s11 = smov 0   ;;  %s637_s12 = smov 0  }
   0x6   :  { %s639_s13 = smov 0   ;;  %s641_s14 = smov 0  }
   0x7 LB: > { %s656_s0 = sadd.s32 4294967295, %s610_s14   ;;  %s397_s15 = sadd.s32 4294967294, %s610_s14   ;;  %s610_s14 = sphi %s641_s14, %s811_s14   ;;  %s606_s13 = sphi %s639_s13, %s810_s13   ;;  %s602_s12 = sphi %s637_s12, %s809_s12   ;;  %s598_s11 = sphi %s635_s11, %s808_s11  }
   0x8   : > { %s660_s16 = sadd.s32 1, %s610_s14   ;;  %s47_s17 = sadd.s32 1, %s606_s13 }
   0x9   : > { %s44_s18 = ssub.s32 %s610_s14, %s660_s16  ;;  %p54_p0 = scmp.ne.s32.totalorder %s606_s13, %s602_s12 }
   0xa   : > { %p45_p1 = scmp.eq.s32.totalorder %s44_s18, 0  ;;  %p55_p2 = scmp.eq.s32.totalorder %s610_s14, 0 }
   0xb   : > { %p60_p3 = scmp.ne.s32.totalorder %s602_s12, %s598_s11  ;;  %p61_p4 = scmp.eq.s32.totalorder %s656_s0, 0 }
   0xc   : > { %s672_s19 = scalar_select %p45_p1, %s606_s13, %s47_s17  }
   0xd   : > { %p674_p5 = por %p55_p2, %p54_p0  ;;  %p678_p6 = por %p61_p4, %p60_p3 }
   0xe   : > { %p84_p7 = scmp.eq.s32.totalorder %s656_s0, 1  ;;  %p90_p8 = scmp.eq.s32.totalorder %s397_s15, 1 }
   0xf   : > { %p427_p10 = scmp.lt.s32.totalorder %s610_s14, 2  ;;  %s113_s24 = sand.u32 1, %s606_s13  }
  0x10   : > { %p685_p11 = por %p84_p7, %p54_p0  ;;  %p689_p12 = por %p90_p8, %p60_p3 }
  0x11   : > { %s411_s25 = sshll.u32 %s610_s14, 10  ;;  %s400_s26 = sshll.u32 %s113_s24, 6 }
  0x12   : > { %s802_s22 = scalar_select %p685_p11, 1, 0 }
  0x13   : > { %s803_s23 = scalar_select %p689_p12, 1, 0 }
  0x14   : > { %s698_s29 = scalar_lea.hbm %s797_s1, %s411_s25  ;;  %s117_s30 = scalar_lea.vmem [#allocation3], %s400_s26 }
  0x15   : > { %s124_s3 = sshll.u32 %s117_s30, 4  ;;  %p702_p13 = pnand %p427_p10, %p674_p5  ;;  %s706_s3 = int_to_ptr.vmem [resolvable:$true] %s124_s3 }
  0x16   : > { %s708_s5 = scalar_lea.sflag [#allocation4], %s113_s24  ;;  %s514_s6 = scalar_lea.hbm %s698_s29, 1024 }
  0x17   : > { %p515_p0 = scmp.ne.s32.totalorder %s698_s29, %s514_s6  ;;  %p516_p1 = pneg %p702_p13 }
  0x18   : > { %s519_s9 = scalar_lea.hbm %s797_s1, 2048  ;;  %p520_p4 = scmp.lt.u32.totalorder %s698_s29, %s797_s1 }
  0x19   : > { %p517_p2 = pnand %p516_p1, %p515_p0  ;;  %p521_p5 = scmp.lt.u32.totalorder %s519_s9, %s514_s6 }
  0x1a   : > { %p523_p8 = scmp.lt.u32.totalorder %s514_s6, %s698_s29 }
  0x1b   : > { %p518_p3 = pneg %p517_p2  ;;  %p522_p7 = por %p521_p5, %p520_p4 }
  0x1d   : > { %p524_p10 = por %p523_p8, %p522_p7 }
  0x1f   : > { %p525_p9 = pnand %p524_p10, %p518_p3 }
  0x21   : > { %528 = shalt.err (!%p525_p9)
}
  0x22   : > { %s529_s17 = scalar_lea.vmem %s706_s3, 1024  ;;  %s612_s18 = smov [#allocation3]  }
  0x23   : > { %p530_p0 = scmp.ne.s32.totalorder %s706_s3, %s529_s17  ;;  %s534_s20 = sshll.u32 %s612_s18, 4  ;;  %s535_s20 = int_to_ptr.vmem [resolvable:$false] %s534_s20 }
  0x24   : > { %s536_s24 = scalar_lea.vmem %s535_s20, 2048  ;;  %p537_p11 = scmp.lt.s32.totalorder %s706_s3, %s535_s20 }
  0x25   : > { %p532_p2 = pnand %p530_p0, %p516_p1  ;;  %p538_p4 = scmp.lt.s32.totalorder %s536_s24, %s529_s17 }
  0x27   : > { %p533_p12 = pneg %p532_p2  ;;  %p539_p5 = por %p538_p4, %p537_p11 }
  0x29   : > { %p540_p7 = pnand %p539_p5, %p533_p12 }
  0x2b   : > { %543 = shalt.err (!%p540_p7)
}
  0x2c   : > { %s613_s25 = smov 512   ;;  %s614_s26 = smov 32  }
  0x2d   : > { %422 = dma.hbm_to_vmem [thread:$0]  (!%p702_p13), %s698_s29, 1024, %s706_s3, %s708_s5, %s613_s25, %s613_s25, %s614_s26  }
  0x2e   : > { %p403_p9 = scmp.ge.s32.totalorder %s610_s14, 1  ;;  %p132_p1 = scmp.lt.s32.totalorder %s610_s14, 3 }
  0x30   : > { %p133_p3 = pnand %p403_p9, %p132_p1 }
  0x31   : > { %s739_s27 = sand.u32 (!%p133_p3), 1, %s602_s12  }
  0x32   : > { %136 = sbr.rel (%p133_p3) target bundleno = 167 (0xa7), region = 28  ;;  %s404_s28 = sshll.u32 (!%p133_p3), %s739_s27, 6 }
  0x33   : > { %s139_s30 = scalar_lea.sflag (!%p133_p3), [#allocation4], %s739_s27  ;;  %s142_s6 = scalar_lea.vmem (!%p133_p3), [#allocation3], %s404_s28 }
  0x39   : > { %589 = dma.done.wait (%p678_p6), %s139_s30, 1024  }
  0x3a   : > { %591 = vsyncadd (%p678_p6), %s139_s30, 4294966272  ;;  %s163_s4 = sld [smem:[#allocation2]]  ;;  %v164_v1 = vld [vmem:[%s142_s6] sm:$0xff]  ;;  %v165_v2 = vld [vmem:[%s142_s6 + $0x8] sm:$0xff]  ;;  %s405_s29 = sshll.u32 %s739_s27, 2 }
  0x3b   : > { %v166_v3 = vld [vmem:[%s142_s6 + $0x10] sm:$0xff]  ;;  %v167_v4 = vld [vmem:[%s142_s6 + $0x18] sm:$0xff]  ;;  %v168_v5 = vld [vmem:[%s142_s6 + $0x20] sm:$0xff]  ;;  %v172_v7 = vmax.f32 %v164_v1, 1e-06  ;;  %s412_s3 = sshll.u32 %s656_s0, 6 }
  0x3c   : > { %v169_v6 = vld [vmem:[%s142_s6 + $0x28] sm:$0xff]  ;;  %v170_v8 = vld [vmem:[%s142_s6 + $0x30] sm:$0xff]  ;;  %v173_v9 = vmax.f32 %v165_v2, 1e-06  ;;  %v174_v10 = vmax.f32 %v166_v3, 1e-06  ;;  %s752_s10 = scalar_lea.hbm %s798_s2, %s412_s3 }
  0x3d   : > { %v171_v11 = vld [vmem:[%s142_s6 + $0x38] sm:$0xff]  ;;  %v175_v12 = vmax.f32 %v167_v4, 1e-06  ;;  %v176_v13 = vmax.f32 %v168_v5, 1e-06  ;;  %s162_s5 = scalar_lea.vmem [#allocation6], %s405_s29 }
  0x3e   : > { %v177_v14 = vmax.f32 %v169_v6, 1e-06  ;;  %v178_v15 = vmax.f32 %v170_v8, 1e-06  ;;  %v179_v16 = vmax.f32 %v171_v11, 1e-06 }
  0x3f   : > { %s327_s7 = sshll.u32 %s162_s5, 4  ;;  %s313_s15 = scalar_lea.sflag [#allocation5], %s739_s27  ;;  %s754_s7 = int_to_ptr.vmem [resolvable:$true] %s327_s7 }
  0x40   : > { %v196_v0 = vstv %s163_s4  ;;  %s544_s17 = scalar_lea.vmem %s754_s7, 64  ;;  %p805_p11 = scmp.ne.s32.totalorder %s802_s22, 0 }
  0x41   : > { %464 = vrcp.f32 %v196_v0  ;;  %p545_p6 = scmp.ne.s32.totalorder %s754_s7, %s544_s17  ;;  %s616_s0 = smov [#allocation6]  }
  0x42   : > { %466 = vlog2.f32 %v172_v7  ;;  %s548_s18 = sshll.u32 %s616_s0, 4  ;;  %s549_s18 = int_to_ptr.vmem [resolvable:$false] %s548_s18 }
  0x43   : > { %468 = vlog2.f32 %v173_v9  ;;  %p546_p12 = pnand %p545_p6, %p805_p11  ;;  %s550_s20 = scalar_lea.vmem %s549_s18, 128 }
  0x44   : > { %470 = vlog2.f32 %v174_v10  ;;  %p551_p8 = scmp.lt.s32.totalorder %s754_s7, %s549_s18  ;;  %p552_p10 = scmp.lt.s32.totalorder %s550_s20, %s544_s17 }
  0x45   : > { %472 = vlog2.f32 %v175_v12  ;;  %p547_p13 = pneg %p546_p12 }
  0x46   : > { %474 = vlog2.f32 %v176_v13  ;;  %p553_p0 = por %p552_p10, %p551_p8 }
  0x47   : > { %476 = vlog2.f32 %v177_v14 }
  0x48   : > { %478 = vlog2.f32 %v178_v15  ;;  %p554_p2 = pnand %p553_p0, %p547_p13 }
  0x49   : > { %480 = vlog2.f32 %v179_v16 }
  0x4b   : > { %v465_v17 = vpop.eup %464 }
  0x4c   : > { %413 = vpush %v465_v17  ;;  %v467_v18 = vpop.eup %466 }
  0x4d   : > { %v469_v19 = vpop.eup %468  ;;  %v181_v20 = vmul.f32 0.6931472, %v467_v18 }
  0x4e   : > { %v471_v21 = vpop.eup %470  ;;  %v183_v22 = vmul.f32 0.6931472, %v469_v19 }
  0x4f   : > { %v473_v23 = vpop.eup %472  ;;  %v185_v24 = vmul.f32 0.6931472, %v471_v21  ;;  %v197_v25 = vmul.f32 %v196_v0, %v181_v20 }
  0x50   : > { %v475_v26 = vpop.eup %474  ;;  %v187_v27 = vmul.f32 0.6931472, %v473_v23  ;;  %v198_v28 = vmul.f32 %v196_v0, %v183_v22 }
  0x51   : > { %v477_v29 = vpop.eup %476  ;;  %v189_v30 = vmul.f32 0.6931472, %v475_v26  ;;  %v199_v31 = vmul.f32 %v196_v0, %v185_v24  ;;  %v205_v32 = vmul.f32 1.442695, %v197_v25 }
  0x52   : > { %v479_v33 = vpop.eup %478  ;;  %v191_v34 = vmul.f32 0.6931472, %v477_v29  ;;  %v200_v35 = vmul.f32 %v196_v0, %v187_v27  ;;  %v207_v36 = vmul.f32 1.442695, %v198_v28 }
  0x53   : > { %v481_v37 = vpop.eup %480  ;;  %v193_v38 = vmul.f32 0.6931472, %v479_v33  ;;  %v201_v39 = vmul.f32 %v196_v0, %v189_v30  ;;  %482 = vpow2.f32 %v205_v32  ;;  %v209_v40 = vmul.f32 1.442695, %v199_v31 }
  0x54   : > { %v195_v41 = vmul.f32 0.6931472, %v481_v37  ;;  %v202_v42 = vmul.f32 %v196_v0, %v191_v34  ;;  %484 = vpow2.f32 %v207_v36  ;;  %v211_v43 = vmul.f32 1.442695, %v200_v35 }
  0x55   : > { %v203_v44 = vmul.f32 %v196_v0, %v193_v38  ;;  %486 = vpow2.f32 %v209_v40  ;;  %v213_v45 = vmul.f32 1.442695, %v201_v39 }
  0x56   : > { %v204_v46 = vmul.f32 %v196_v0, %v195_v41  ;;  %488 = vpow2.f32 %v211_v43  ;;  %v215_v47 = vmul.f32 1.442695, %v202_v42  ;;  %v615_v43 = vmov 1966171168  }
  0x57   : > { %490 = vpow2.f32 %v213_v45  ;;  %v217_v48 = vmul.f32 1.442695, %v203_v44  ;;  %v285_v44 = vunpack.c.l.s4 %v615_v43  ;;  %v287_v45 = vlaneseq }
  0x58   : > { %492 = vpow2.f32 %v215_v47  ;;  %v219_v49 = vmul.f32 1.442695, %v204_v46 }
  0x59   : > { %494 = vpow2.f32 %v217_v48  ;;  %v286_v46 = vunpack.c.0.s8 %v285_v44  ;;  %v288_v47 = vshrl.u32 %v287_v45, 7  ;;  %vm309_vm0 = vcmp.lt.s32.totalorder %v287_v45, 512 }
  0x5a   : > { %496 = vpow2.f32 %v219_v49 }
  0x5b   : > { %v289_v49 = vsub.s32 %v286_v46, %v288_v47 }
  0x5d   : > { %v483_v50 = vpop.eup %482 }
  0x5e   : > { %v485_v51 = vpop.eup %484 }
  0x5f   : > { %v487_v52 = vpop.eup %486 }
  0x60   : > { %v489_v53 = vpop.eup %488 }
  0x61   : > { %v491_v54 = vpop.eup %490 }
  0x62   : > { %v493_v55 = vpop.eup %492  ;;  %v221_v56 = vadd.f32 %v491_v54, %v483_v50 }
  0x63   : > { %v495_v57 = vpop.eup %494  ;;  %v228_v58 = vadd.f32 %v493_v55, %v485_v51 }
  0x64   : > { %v497_v59 = vpop.eup %496  ;;  %v222_v60 = vrot.slane %v221_v56, 4  ;;  %v235_v61 = vadd.f32 %v495_v57, %v487_v52 }
  0x65   : > { %v229_v62 = vrot.slane %v228_v58, 4  ;;  %v242_v63 = vadd.f32 %v497_v59, %v489_v53 }
  0x66   : > { %v223_v0 = vadd.f32 %v222_v60, %v221_v56  ;;  %v236_v1 = vrot.slane %v235_v61, 4 }
  0x67   : > { %v230_v2 = vadd.f32 %v229_v62, %v228_v58  ;;  %v243_v3 = vrot.slane %v242_v63, 4 }
  0x68   : > { %v224_v4 = vrot.slane %v223_v0, 2  ;;  %v237_v5 = vadd.f32 %v236_v1, %v235_v61 }
  0x69   : > { %v231_v6 = vrot.slane %v230_v2, 2  ;;  %v244_v7 = vadd.f32 %v243_v3, %v242_v63 }
  0x6a   : > { %v225_v8 = vadd.f32 %v224_v4, %v223_v0  ;;  %v238_v9 = vrot.slane %v237_v5, 2 }
  0x6b   : > { %v232_v10 = vadd.f32 %v231_v6, %v230_v2  ;;  %v245_v11 = vrot.slane %v244_v7, 2 }
  0x6c   : > { %v226_v12 = vrot.slane %v225_v8, 1  ;;  %v239_v13 = vadd.f32 %v238_v9, %v237_v5 }
  0x6d   : > { %v233_v14 = vrot.slane %v232_v10, 1  ;;  %v246_v15 = vadd.f32 %v245_v11, %v244_v7 }
  0x6e   : > { %v227_v16 = vadd.f32 %v226_v12, %v225_v8  ;;  %v240_v17 = vrot.slane %v239_v13, 1 }
  0x6f   : > { %v234_v18 = vadd.f32 %v233_v14, %v232_v10  ;;  %v247_v19 = vrot.slane %v246_v15, 1 }
  0x70   : > { %v241_v20 = vadd.f32 %v240_v17, %v239_v13  ;;  %v250_v21 = vmul.f32 0.0625, %v227_v16 }
  0x71   : > { %v248_v22 = vadd.f32 %v247_v19, %v246_v15  ;;  %v251_v23 = vmul.f32 0.0625, %v234_v18 }
  0x72   : > { %v252_v24 = vmul.f32 0.0625, %v241_v20  ;;  %498 = vlog2.f32 %v250_v21 }
  0x73   : > { %v253_v25 = vmul.f32 0.0625, %v248_v22  ;;  %500 = vlog2.f32 %v251_v23 }
  0x74   : > { %502 = vlog2.f32 %v252_v24 }
  0x75   : > { %504 = vlog2.f32 %v253_v25 }
  0x7c   : > { %v499_v26 = vpop.eup %498 }
  0x7d   : > { %s414_s21 = spop %413  ;;  %v501_v27 = vpop.eup %500  ;;  %v255_v28 = vmul.f32 0.6931472, %v499_v26 }
  0x7e   : > { %v265_v29 = vstv %s414_s21  ;;  %v503_v30 = vpop.eup %502  ;;  %v257_v31 = vmul.f32 0.6931472, %v501_v27 }
  0x7f   : > { %v505_v32 = vpop.eup %504  ;;  %v259_v33 = vmul.f32 0.6931472, %v503_v30  ;;  %v266_v34 = vmul.f32 %v265_v29, %v255_v28 }
  0x80   : > { %v261_v35 = vmul.f32 0.6931472, %v505_v32  ;;  %v267_v36 = vmul.f32 %v265_v29, %v257_v31 }
  0x81   : > { %v268_v37 = vmul.f32 %v265_v29, %v259_v33  ;;  %v270_v38 = vmul.f32 1.442695, %v266_v34 }
  0x82   : > { %v269_v39 = vmul.f32 %v265_v29, %v261_v35  ;;  %v272_v40 = vmul.f32 1.442695, %v267_v36 }
  0x83   : > { %506 = vpow2.f32 %v270_v38  ;;  %v274_v41 = vmul.f32 1.442695, %v268_v37 }
  0x84   : > { %508 = vpow2.f32 %v272_v40  ;;  %v276_v42 = vmul.f32 1.442695, %v269_v39 }
  0x85   : > { %510 = vpow2.f32 %v274_v41 }
  0x86   : > { %512 = vpow2.f32 %v276_v42 }
  0x8d   : > { %v507_v48 = vpop.eup %506 }
  0x8e   : > { %v509_v50 = vpop.eup %508 }
  0x8f   : > { %v511_v51 = vpop.eup %510  ;;  %v282_v52 = vcombine.low %v507_v48, %v509_v50 }
  0x90   : > { %v513_v53 = vpop.eup %512 }
  0x91   : > { %v283_v54 = vcombine.low %v511_v51, %v513_v53  ;;  %v290_v55 = vrot.slane %v282_v52, %v289_v49 }
  0x93   : > { %v297_v56 = vrot.slane %v283_v54, %v289_v49 }
  0x95   : > { %v298_v57 = vcombine.low %v290_v55, %v297_v56 }
  0x97   : > { %v305_v58 = vrot.slane %v298_v57, %v289_v49 }
  0x99   : > { %311 = vst.msk [vmem:[%s162_s5] sm:$0xf] %vm309_vm0, %v305_v58 }
  0x9a   : > { %557 = shalt.err (!%p554_p2)
}
  0x9b   : > { %s558_s24 = scalar_lea.hbm %s752_s10, 64  ;;  %s562_s27 = scalar_lea.hbm %s798_s2, 128 }
  0x9c   : > { %p559_p4 = scmp.ne.s32.totalorder %s752_s10, %s558_s24  ;;  %p563_p9 = scmp.lt.u32.totalorder %s752_s10, %s798_s2 }
  0x9d   : > { %p564_p1 = scmp.lt.u32.totalorder %s562_s27, %s558_s24  ;;  %p566_p6 = scmp.lt.u32.totalorder %s558_s24, %s752_s10 }
  0x9e   : > { %p560_p5 = pnand %p559_p4, %p805_p11 }
  0x9f   : > { %p565_p3 = por %p564_p1, %p563_p9 }
  0xa0   : > { %p561_p7 = pneg %p560_p5 }
  0xa1   : > { %p567_p12 = por %p566_p6, %p565_p3 }
  0xa3   : > { %p568_p13 = pnand %p567_p12, %p561_p7 }
  0xa5   : > { %571 = shalt.err (!%p568_p13)
}
  0xa6   : > { %417 = dma.vmem_to_hbm [thread:$0]  (%p805_p11), %s754_s7, 64, %s752_s10, %s313_s15  }
  0xa7 PF: > { %s339_s6 = sand.u32 1, %s598_s11   ;;  %p806_p8 = scmp.ne.s32.totalorder %s803_s23, 0 }
  0xa8   : > { %p807_p10 = scmp.ge.s32.totalorder %s610_s14, 2  ;;  %s340_s4 = scalar_lea.sflag [#allocation5], %s339_s6 }
  0xaa   : > { %p424_p0 = pnand %p807_p10, %p806_p8 }
  0xac   : > { %593 = dma.done.wait (!%p424_p0), %s340_s4, 64  }
  0xad   : > { %595 = vsyncadd (!%p424_p0), %s340_s4, 4294967232  ;;  %p16_p2 = scmp.ge.s32.totalorder %s660_s16, 4   ;;  %s808_s11 = smov %s602_s12 }
  0xae   : > { %s809_s12 = smov %s606_s13  ;;  %s810_s13 = smov %s672_s19 }
  0xaf   : > { %s811_s14 = smov %s660_s16  ;;  %18 = sbr.rel (!%p16_p2) target bundleno = 7 (0x7), region = 73 }
  0xb6   :  { %345 = vsyncpa [#allocation4], 1 }
  0xb7   :  { %347 = vsyncpa [#allocation4 + $0x1], 1 }
  0xb8   :  { %348 = vsyncpa [#allocation5], 1 }
  0xb9   :  { %350 = vsyncpa [#allocation5 + $0x1], 1 }

</bundles_post_ra>
